<compile_context>
chip_gen: v7x
topology: tpu7x:2x2x1
jax: 0.10.0
libtpu: 0.0.40
codegen_flags: <defaults>
</compile_context>

<pallas_src>
import functools

import jax
import jax.numpy as jnp
import numpy as np
from jax.experimental import pallas as pl
from jax.experimental.pallas import tpu as pltpu


def _round_up(v, m):
    return (v + m - 1) // m * m


# ----------------------------------------------------------------------------
# Fully fused kernel: all layers in one pallas_call (grid axis = layer index).
# L_hat (bf16) and X stay VMEM-resident; activations carried in VMEM scratch.
# ----------------------------------------------------------------------------
def _pcheby_fused_kernel(lhat_ref, x0_ref, w0_ref, w1_ref, b_ref, o_ref, x_sc):
    l = pl.program_id(0)
    is_last = l == pl.num_programs(0) - 1

    @pl.when(l == 0)
    def _():
        x_sc[...] = x0_ref[...]

    x = x_sc[...]                                   # (Np, FP) f32
    # T_1(L) x = L_hat @ X   (bf16 operands, f32 accumulation on the MXU)
    tx1 = jnp.dot(lhat_ref[...], x.astype(jnp.bfloat16),
                  preferred_element_type=jnp.float32)
    out = jnp.dot(x, w0_ref[0], preferred_element_type=jnp.float32)
    out = out + jnp.dot(tx1, w1_ref[0], preferred_element_type=jnp.float32)
    out = out + b_ref[0]

    @pl.when(jnp.logical_not(is_last))
    def _():
        x_sc[...] = jnp.maximum(out, 0.0)           # ReLU, feeds next layer

    @pl.when(is_last)
    def _():
        o_ref[...] = jnp.tanh(out).astype(o_ref.dtype)


def pcheby_fused(l_hat_bf16, x_pad, w0s, w1s, bs):
    Np, FP = x_pad.shape
    L = w0s.shape[0]
    return pl.pallas_call(
        _pcheby_fused_kernel,
        out_shape=jax.ShapeDtypeStruct((Np, FP), jnp.float32),
        grid=(L,),
        in_specs=[
            pl.BlockSpec((Np, Np), lambda l: (0, 0)),       # L_hat (resident, bf16)
            pl.BlockSpec((Np, FP), lambda l: (0, 0)),       # X0 (resident)
            pl.BlockSpec((1, FP, FP), lambda l: (l, 0, 0)),  # W0[layer]
            pl.BlockSpec((1, FP, FP), lambda l: (l, 0, 0)),  # W1[layer]
            pl.BlockSpec((1, 1, FP), lambda l: (l, 0, 0)),   # b[layer]
        ],
        out_specs=pl.BlockSpec((Np, FP), lambda l: (0, 0)),
        scratch_shapes=[pltpu.VMEM((Np, FP), jnp.float32)],
        compiler_params=pltpu.CompilerParams(
            dimension_semantics=("arbitrary",),             # layer loop is sequential
            vmem_limit_bytes=48 * 1024 * 1024,              # fits v7x's 64 MiB VMEM
        ),
    )(l_hat_bf16, x_pad, w0s, w1s, bs)


# ----------------------------------------------------------------------------
# Scalable per-layer kernel: rows tiled (parallel) x contraction tiled over N.
# ----------------------------------------------------------------------------
def _cheb_tiled_kernel(lhat_ref, xk_ref, xi_ref, w0_ref, w1_ref, b_ref,
                       o_ref, acc_ref, *, act):
    k = pl.program_id(1)

    @pl.when(k == 0)
    def _():
        acc_ref[...] = jnp.zeros_like(acc_ref)

    # Accumulate (L_hat @ X) for this row-block, k-slice by k-slice.
    acc_ref[...] += jnp.dot(lhat_ref[...], xk_ref[...].astype(jnp.bfloat16),
                            preferred_element_type=jnp.float32)

    @pl.when(k == pl.num_programs(1) - 1)
    def _():
        out = jnp.dot(xi_ref[...], w0_ref[...], preferred_element_type=jnp.float32)
        out = out + jnp.dot(acc_ref[...], w1_ref[...],
                            preferred_element_type=jnp.float32)
        out = out + b_ref[...]
        if act == "relu":
            out = jnp.maximum(out, 0.0)
        else:
            out = jnp.tanh(out)
        o_ref[...] = out.astype(o_ref.dtype)


def cheb_conv_tiled(l_hat_bf16, x, w0, w1, b, *, act):
    Np, FP = x.shape
    tn = 256 if Np % 256 == 0 else 128              # big, MXU-filling node tiles
    tk = tn
    kernel = functools.partial(_cheb_tiled_kernel, act=act)
    return pl.pallas_call(
        kernel,
        out_shape=jax.ShapeDtypeStruct((Np, FP), jnp.float32),
        grid=(Np // tn, Np // tk),
        in_specs=[
            pl.BlockSpec((tn, tk), lambda i, k: (i, k)),    # L_hat tile (bf16)
            pl.BlockSpec((tk, FP), lambda i, k: (k, 0)),    # X, k-slice
            pl.BlockSpec((tn, FP), lambda i, k: (i, 0)),    # X, local row-block
            pl.BlockSpec((FP, FP), lambda i, k: (0, 0)),    # W0 (resident)
            pl.BlockSpec((FP, FP), lambda i, k: (0, 0)),    # W1 (resident)
            pl.BlockSpec((1, FP), lambda i, k: (0, 0)),     # bias (resident)
        ],
        out_specs=pl.BlockSpec((tn, FP), lambda i, k: (i, 0)),
        scratch_shapes=[pltpu.VMEM((tn, FP), jnp.float32)],
        compiler_params=pltpu.CompilerParams(
            dimension_semantics=("parallel", "arbitrary"),  # rows shard across TCs
            vmem_limit_bytes=48 * 1024 * 1024,
        ),
    )(l_hat_bf16, x, x, w0, w1, b)


# ----------------------------------------------------------------------------
# Glue: dense scaled Chebyshev Laplacian from edge_index (pure JAX scatter)
# ----------------------------------------------------------------------------
def scaled_laplacian_dense(edge_index, num_nodes):
    # PyG ChebConv with sym norm and lambda_max = 2:
    #   L_hat = (2/lambda_max) * (I - D^{-1/2} A D^{-1/2}) - I = -D^{-1/2} A D^{-1/2}
    row, col = edge_index[0], edge_index[1]
    keep = (row != col).astype(jnp.float32)
    adj = jnp.zeros((num_nodes, num_nodes), jnp.float32).at[row, col].add(keep)
    deg = adj.sum(axis=1)
    dinv = jnp.where(deg > 0, 1.0 / jnp.sqrt(deg), 0.0)
    return -(dinv[:, None] * adj * dinv[None, :])


# ----------------------------------------------------------------------------
# PCheby forward
# ----------------------------------------------------------------------------
def pcheby_forward(params, x, edge_index, *, fuse=None):
    # TODO(synk): nn.Dropout is a no-op in eval mode; training-mode random
    # dropout masks are not implemented here.
    N, Fin = x.shape
    layers = [params["conv_input"], *params["hidden"], params["conv_output"]]
    acts = ["relu"] * (len(layers) - 1) + ["tanh"]

    FP = _round_up(max([Fin] + [w0.shape[1] for (w0, _, _) in layers]), 128)
    Np = _round_up(N, 128)

    l_hat = scaled_laplacian_dense(edge_index, N)
    l_hat = (jnp.zeros((Np, Np), jnp.float32).at[:N, :N].set(l_hat)
             .astype(jnp.bfloat16))                         # halve the HBM stream

    x_pad = jnp.zeros((Np, FP), jnp.float32).at[:N, :Fin].set(x)

    def pad_layer(w0, w1, b):
        fin, fout = w0.shape
        return (jnp.zeros((FP, FP), jnp.float32).at[:fin, :fout].set(w0),
                jnp.zeros((FP, FP), jnp.float32).at[:fin, :fout].set(w1),
                jnp.zeros((1, FP), jnp.float32).at[:, :fout].set(b))

    padded = [pad_layer(*p) for p in layers]

    if fuse is None:
        # Resident L_hat + X + out + scratch + weight blocks, ~2x for buffering.
        est = 2 * Np * Np * 2 + 5 * Np * FP * 4 + 4 * FP * FP * 4
        fuse = est <= 40 * 1024 * 1024

    if fuse:
        w0s = jnp.stack([p[0] for p in padded])
        w1s = jnp.stack([p[1] for p in padded])
        bs = jnp.stack([p[2] for p in padded])
        out = pcheby_fused(l_hat, x_pad, w0s, w1s, bs)
    else:
        h = x_pad
        for (w0, w1, b), act in zip(padded, acts):
            h = cheb_conv_tiled(l_hat, h, w0, w1, b, act=act)
        out = h

    n_classes = layers[-1][0].shape[1]
    return out[:N, :n_classes]


# Pure-JAX reference (same math incl. bf16 L_hat) for correctness checking.
def pcheby_reference(params, x, edge_index):
    N = x.shape[0]
    l_hat = scaled_laplacian_dense(edge_index, N).astype(jnp.bfloat16)

    def layer(x, p, act):
        w0, w1, b = p
        tx1 = jnp.dot(l_hat, x.astype(jnp.bfloat16),
                      preferred_element_type=jnp.float32)
        out = (jnp.dot(x, w0, preferred_element_type=jnp.float32,
                       precision=jax.lax.Precision.HIGHEST)
               + jnp.dot(tx1, w1, preferred_element_type=jnp.float32,
                         precision=jax.lax.Precision.HIGHEST)
               + b)
        return jnp.maximum(out, 0.0) if act == "relu" else jnp.tanh(out)

    x = layer(x, params["conv_input"], "relu")
    for p in params["hidden"]:
        x = layer(x, p, "relu")
    return layer(x, params["conv_output"], "tanh")


def init_params(key, num_features, n_classes, num_hidden, num_hidden_layers):
    def glorot(key, fin, fout):
        s = jnp.sqrt(6.0 / (fin + fout))
        return jax.random.uniform(key, (fin, fout), jnp.float32, -s, s)

    def cheb_params(key, fin, fout):
        k0, k1 = jax.random.split(key)
        return (glorot(k0, fin, fout), glorot(k1, fin, fout),
                jnp.zeros((1, fout), jnp.float32))

    keys = jax.random.split(key, num_hidden_layers + 2)
    return {
        "conv_input": cheb_params(keys[0], num_features, num_hidden),
        "hidden": [cheb_params(keys[1 + i], num_hidden, num_hidden)
                   for i in range(num_hidden_layers)],
        "conv_output": cheb_params(keys[-1], num_hidden, n_classes),
    }


if __name__ == "__main__":
    NUM_NODES = 64
    NUM_EDGES = 256
    NUM_FEATURES = 16
    NUM_HIDDEN = 32
    NUM_HIDDEN_LAYERS = 2
    N_CLASSES = 8

    key = jax.random.PRNGKey(0)
    kx, ke, kp = jax.random.split(key, 3)

    x = jax.random.normal(kx, (NUM_NODES, NUM_FEATURES), jnp.float32)
    # Random undirected edge list (both directions), like a PyG edge_index.
    src = jax.random.randint(ke, (NUM_EDGES // 2,), 0, NUM_NODES)
    dst = jax.random.randint(jax.random.fold_in(ke, 1), (NUM_EDGES // 2,), 0, NUM_NODES)
    edge_index = jnp.stack([jnp.concatenate([src, dst]),
                            jnp.concatenate([dst, src])]).astype(jnp.int32)

    params = init_params(kp, NUM_FEATURES, N_CLASSES, NUM_HIDDEN, NUM_HIDDEN_LAYERS)

    ref = jax.block_until_ready(pcheby_reference(params, x, edge_index))

    # Fused single-launch path (used automatically for small/medium graphs)...
    out_fused = jax.block_until_ready(pcheby_forward(params, x, edge_index, fuse=True))
    # ...and the scalable k-tiled per-layer path, exercised explicitly.
    out_tiled = jax.block_until_ready(pcheby_forward(params, x, edge_index, fuse=False))

    assert out_fused.shape == (NUM_NODES, N_CLASSES), out_fused.shape
    assert out_tiled.shape == (NUM_NODES, N_CLASSES), out_tiled.shape
    np.testing.assert_allclose(np.asarray(out_fused), np.asarray(ref), rtol=1e-2, atol=1e-2)
    np.testing.assert_allclose(np.asarray(out_tiled), np.asarray(ref), rtol=1e-2, atol=1e-2)
    print("KERNEL_OK")
</pallas_src>

<mosaic_0001>
module attributes {stable_mosaic.version = 11 : i64} {
  func.func @_pcheby_fused_kernel(%arg0: i32, %arg1: memref<128x128xbf16, #tpu.memory_space<vmem>>, %arg2: memref<128x128xf32, #tpu.memory_space<vmem>>, %arg3: memref<1x128x128xf32, #tpu.memory_space<vmem>>, %arg4: memref<1x128x128xf32, #tpu.memory_space<vmem>>, %arg5: memref<1x1x128xf32, #tpu.memory_space<vmem>>, %arg6: memref<128x128xf32, #tpu.memory_space<vmem>>, %arg7: memref<128x128xf32, #tpu.memory_space<vmem>>) attributes {dimension_semantics = [#tpu.dimension_semantics<arbitrary>], iteration_bounds = array<i64: 4>, scalar_prefetch = 0 : i64, scratch_operands = 1 : i64, tpu.core_type = #tpu.core_type<tc>, window_params = [{pipeline_mode = #tpu.pipeline_mode<synchronous>, transform_indices = @transform_0, window_bounds = array<i64: 128, 128>}, {pipeline_mode = #tpu.pipeline_mode<synchronous>, transform_indices = @transform_1, window_bounds = array<i64: 128, 128>}, {transform_indices = @transform_2, window_bounds = array<i64: 1, 128, 128>}, {transform_indices = @transform_3, window_bounds = array<i64: 1, 128, 128>}, {transform_indices = @transform_4, window_bounds = array<i64: 1, 1, 128>}, {pipeline_mode = #tpu.pipeline_mode<synchronous>, transform_indices = @transform_5, window_bounds = array<i64: 128, 128>}]} {
    %c3_i32 = arith.constant 3 : i32
    %0 = arith.cmpi eq, %arg0, %c3_i32 : i32
    %c0_i32 = arith.constant 0 : i32
    %1 = arith.cmpi eq, %arg0, %c0_i32 : i32
    %2 = arith.extui %1 : i1 to i32
    %c0_i32_0 = arith.constant 0 : i32
    %3 = arith.cmpi ne, %2, %c0_i32_0 : i32
    scf.if %3 {
      %c0_17 = arith.constant 0 : index
      %c0_18 = arith.constant 0 : index
      %24 = vector.load %arg2[%c0_17, %c0_18] : memref<128x128xf32, #tpu.memory_space<vmem>>, vector<128x128xf32>
      %c0_19 = arith.constant 0 : index
      %c0_20 = arith.constant 0 : index
      %25 = vector.load %arg7[%c0_19, %c0_20] : memref<128x128xf32, #tpu.memory_space<vmem>>, vector<128x128xf32>
      tpu.vector_store %arg7[%c0_19, %c0_20], %24 {strides = array<i32>} : memref<128x128xf32, #tpu.memory_space<vmem>>, vector<128x128xf32>,
    } else {
    }
    %c0 = arith.constant 0 : index
    %c0_1 = arith.constant 0 : index
    %4 = vector.load %arg7[%c0, %c0_1] : memref<128x128xf32, #tpu.memory_space<vmem>>, vector<128x128xf32>
    %c0_2 = arith.constant 0 : index
    %c0_3 = arith.constant 0 : index
    %5 = vector.load %arg1[%c0_2, %c0_3] : memref<128x128xbf16, #tpu.memory_space<vmem>>, vector<128x128xbf16>
    %6 = arith.truncf %4 : vector<128x128xf32> to vector<128x128xbf16>
    %cst = arith.constant dense<0.000000e+00> : vector<128x128xf32>
    %7 = tpu.matmul %5, %6, %cst {dimension_numbers = #tpu.dot_dimension_numbers<[1], [0], [0], [1], [0, 0, 1, 1], [], []>} : vector<128x128xbf16>, vector<128x128xbf16>, vector<128x128xf32> -> vector<128x128xf32>
    %c0_4 = arith.constant 0 : index
    %c0_5 = arith.constant 0 : index
    %c0_6 = arith.constant 0 : index
    %8 = vector.load %arg3[%c0_4, %c0_5, %c0_6] : memref<1x128x128xf32, #tpu.memory_space<vmem>>, vector<1x128x128xf32>
    %9 = vector.shape_cast %8 : vector<1x128x128xf32> to vector<128x128xf32>
    %cst_7 = arith.constant dense<0.000000e+00> : vector<128x128xf32>
    %10 = tpu.matmul %4, %9, %cst_7 {dimension_numbers = #tpu.dot_dimension_numbers<[1], [0], [0], [1], [0, 0, 1, 1], [], []>} : vector<128x128xf32>, vector<128x128xf32>, vector<128x128xf32> -> vector<128x128xf32>
    %c0_8 = arith.constant 0 : index
    %c0_9 = arith.constant 0 : index
    %c0_10 = arith.constant 0 : index
    %11 = vector.load %arg4[%c0_8, %c0_9, %c0_10] : memref<1x128x128xf32, #tpu.memory_space<vmem>>, vector<1x128x128xf32>
    %12 = vector.shape_cast %11 : vector<1x128x128xf32> to vector<128x128xf32>
    %cst_11 = arith.constant dense<0.000000e+00> : vector<128x128xf32>
    %13 = tpu.matmul %7, %12, %cst_11 {dimension_numbers = #tpu.dot_dimension_numbers<[1], [0], [0], [1], [0, 0, 1, 1], [], []>} : vector<128x128xf32>, vector<128x128xf32>, vector<128x128xf32> -> vector<128x128xf32>
    %14 = arith.addf %10, %13 : vector<128x128xf32>
    %c0_12 = arith.constant 0 : index
    %c0_13 = arith.constant 0 : index
    %c0_14 = arith.constant 0 : index
    %15 = vector.load %arg5[%c0_12, %c0_13, %c0_14] : memref<1x1x128xf32, #tpu.memory_space<vmem>>, vector<1x1x128xf32>
    %16 = vector.shape_cast %15 : vector<1x1x128xf32> to vector<1x128xf32>
    %17 = vector.broadcast %16 : vector<1x128xf32> to vector<128x128xf32>
    %18 = arith.addf %14, %17 : vector<128x128xf32>
    %true = arith.constant true
    %19 = arith.xori %0, %true : i1
    %20 = arith.extui %19 : i1 to i32
    %c0_i32_15 = arith.constant 0 : i32
    %21 = arith.cmpi ne, %20, %c0_i32_15 : i32
    scf.if %21 {
      %cst_17 = arith.constant 0.000000e+00 : f32
      %24 = vector.broadcast %cst_17 : f32 to vector<128x128xf32>
      %25 = arith.maximumf %18, %24 : vector<128x128xf32>
      %c0_18 = arith.constant 0 : index
      %c0_19 = arith.constant 0 : index
      %26 = vector.load %arg7[%c0_18, %c0_19] : memref<128x128xf32, #tpu.memory_space<vmem>>, vector<128x128xf32>
      tpu.vector_store %arg7[%c0_18, %c0_19], %25 {strides = array<i32>} : memref<128x128xf32, #tpu.memory_space<vmem>>, vector<128x128xf32>,
    } else {
    }
    %22 = arith.extui %0 : i1 to i32
    %c0_i32_16 = arith.constant 0 : i32
    %23 = arith.cmpi ne, %22, %c0_i32_16 : i32
    scf.if %23 {
      %24 = math.tanh %18 : vector<128x128xf32>
      %c0_17 = arith.constant 0 : index
      %c0_18 = arith.constant 0 : index
      %25 = vector.load %arg6[%c0_17, %c0_18] : memref<128x128xf32, #tpu.memory_space<vmem>>, vector<128x128xf32>
      tpu.vector_store %arg6[%c0_17, %c0_18], %24 {strides = array<i32>} : memref<128x128xf32, #tpu.memory_space<vmem>>, vector<128x128xf32>,
    } else {
    }
    return
  }
  func.func @transform_0(%arg0: i32) -> (i32, i32) {
    %c0_i32 = arith.constant 0 : i32
    %c0_i32_0 = arith.constant 0 : i32
    %c0_i32_1 = arith.constant 0 : i32
    return %c0_i32, %c0_i32_0 : i32, i32
  }
  func.func @transform_1(%arg0: i32) -> (i32, i32) {
    %c0_i32 = arith.constant 0 : i32
    %c0_i32_0 = arith.constant 0 : i32
    %c0_i32_1 = arith.constant 0 : i32
    return %c0_i32, %c0_i32_0 : i32, i32
  }
  func.func @transform_2(%arg0: i32) -> (i32, i32, i32) {
    %c0_i32 = arith.constant 0 : i32
    %c0_i32_0 = arith.constant 0 : i32
    %c0_i32_1 = arith.constant 0 : i32
    return %arg0, %c0_i32, %c0_i32_0 : i32, i32, i32
  }
  func.func @transform_3(%arg0: i32) -> (i32, i32, i32) {
    %c0_i32 = arith.constant 0 : i32
    %c0_i32_0 = arith.constant 0 : i32
    %c0_i32_1 = arith.constant 0 : i32
    return %arg0, %c0_i32, %c0_i32_0 : i32, i32, i32
  }
  func.func @transform_4(%arg0: i32) -> (i32, i32, i32) {
    %c0_i32 = arith.constant 0 : i32
    %c0_i32_0 = arith.constant 0 : i32
    %c0_i32_1 = arith.constant 0 : i32
    return %arg0, %c0_i32, %c0_i32_0 : i32, i32, i32
  }
  func.func @transform_5(%arg0: i32) -> (i32, i32) {
    %c0_i32 = arith.constant 0 : i32
    %c0_i32_0 = arith.constant 0 : i32
    %c0_i32_1 = arith.constant 0 : i32
    return %c0_i32, %c0_i32_0 : i32, i32
  }
}

</mosaic_0001>

<bundles_post_ra>
// kernel: tpu_custom_call.1
= control target key start
LH: loop header
LB: loop body
LE: loop exit
PB: predicated region body
PF: predicated region fallthrough
CT: control target
= control target key end

     0   :  { %10 = vsyncpa [#allocation4], 0  ;;  %s2188_s0 = inlined_call_operand.hbm [shape: bf16[128,128], index: 0, kind: input, shape index: {}]   ;;  %s2189_s1 = inlined_call_operand.hbm [shape: f32[128,128], index: 1, kind: input, shape index: {}]   ;;  %s2190_s2 = inlined_call_operand.hbm [shape: f32[4,128,128], index: 2, kind: input, shape index: {}]   ;;  %s2191_s3 = inlined_call_operand.hbm [shape: f32[4,128,128], index: 3, kind: input, shape index: {}]   ;;  %s2192_s4 = inlined_call_operand.vmem [shape: f32[4,1,128], index: 4, kind: input, shape index: {}]   ;;  %s2193_s5 = inlined_call_operand.hbm [shape: f32[128,128], index: 5, kind: output, shape index: {}]  }
   0x1   :  { %11 = vsyncpa [#allocation7], 0 }
   0x2   :  { %12 = vsyncpa [#allocation5], 0  ;;  %s1758_s18 = smov 0   ;;  %s1760_s19 = smov 0  }
   0x3   :  { %s1762_s20 = smov 0   ;;  %s1764_s21 = smov 0  }
   0x4 LB: > { %s1777_s22 = sadd.s32 4294967295, %s1715_s21   ;;  %s1780_s23 = sadd.s32 1, %s1715_s21   ;;  %s1715_s21 = sphi %s1764_s21, %s2222_s21   ;;  %s1711_s20 = sphi %s1762_s20, %s2221_s20   ;;  %s1707_s19 = sphi %s1760_s19, %s2220_s19   ;;  %s1703_s18 = sphi %s1758_s18, %s2219_s18  }
   0x5   : > { %s64_s24 = ssub.s32 %s1715_s21, %s1780_s23  ;;  %s67_s25 = sadd.s32 1, %s1711_s20 }
   0x6   : > { %p65_p0 = scmp.eq.s32.totalorder %s64_s24, 0  ;;  %p74_p1 = scmp.ne.s32.totalorder %s1711_s20, %s1707_s19 }
   0x7   : > { %p75_p2 = scmp.eq.s32.totalorder %s1715_s21, 0  ;;  %p80_p3 = scmp.ne.s32.totalorder %s1707_s19, %s1703_s18 }
   0x8   : > { %s1790_s26 = scalar_select %p65_p0, %s1711_s20, %s67_s25  }
   0x9   : > { %p1792_p4 = por %p75_p2, %p74_p1  ;;  %p2194_p5 = scmp.eq.s32.totalorder %s1777_s22, 0 }
   0xa   : > { %p1056_p6 = scmp.ge.s32.totalorder %s1715_s21, 1  ;;  %p164_p7 = scmp.lt.s32.totalorder %s1715_s21, 5 }
   0xb   : > { %p1801_p8 = por %p2194_p5, %p80_p3  ;;  %s1717_s30 = smov [#allocation3]  }
   0xc   : > { %p1806_p10 = pnand %p1056_p6, %p164_p7  ;;  %s176_s6 = sshll.u32 %s1717_s30, 4  ;;  %s177_s6 = int_to_ptr.vmem [resolvable:$true] %s176_s6 }
   0xd   : > { %s2202_s28 = scalar_select %p1801_p8, 1, 0 }
   0xe   : > { %s2203_s29 = scalar_select %p1806_p10, 1, 0 }
   0xf   : > { %p1425_p11 = pneg %p1806_p10  ;;  %p1441_p13 = scmp.lt.s32.totalorder %s1715_s21, 4 }
  0x10   : > { %s1527_s11 = scalar_lea.hbm %s2188_s0, 1024 }
  0x11   : > { %p1814_p12 = pnand %p1425_p11, %p2194_p5  ;;  %p1821_p0 = pnand %p1441_p13, %p1792_p4 }
  0x12   : > { %p1528_p1 = scmp.ne.s32.totalorder %s2188_s0, %s1527_s11  ;;  %p1534_p4 = scmp.lt.u32.totalorder %s1527_s11, %s2188_s0 }
  0x13   : > { %s2205_s8 = scalar_select %p1821_p0, 1, 0 }
  0x14   : > { %p2198_p2 = pneg %p1814_p12 }
  0x16   : > { %p1530_p3 = pnand %p2198_p2, %p1528_p1 }
  0x18   : > { %p1531_p6 = pneg %p1530_p3 }
  0x1a   : > { %p1536_p7 = pnand %p1534_p4, %p1531_p6 }
  0x1c   : > { %1539 = shalt.err (!%p1536_p7)
}
  0x1d   : > { %s1540_s16 = scalar_lea.vmem %s177_s6, 1024  ;;  %p1548_p5 = scmp.lt.s32.totalorder %s177_s6, %s177_s6 }
  0x1e   : > { %p1541_p11 = scmp.ne.s32.totalorder %s177_s6, %s1540_s16  ;;  %p1549_p8 = scmp.lt.s32.totalorder %s1540_s16, %s1540_s16 }
  0x20   : > { %p1543_p13 = pnand %p1541_p11, %p2198_p2  ;;  %p1550_p10 = por %p1549_p8, %p1548_p5 }
  0x22   : > { %p1544_p9 = pneg %p1543_p13 }
  0x24   : > { %p1551_p0 = pnand %p1550_p10, %p1544_p9 }
  0x26   : > { %1554 = shalt.err (!%p1551_p0)
}
  0x27   : > { %s1718_s17 = smov 64   ;;  %s1719_s18 = smov 4  }
  0x28   : > { %1428 = dma.hbm_to_vmem [thread:$0]  (!%p1814_p12), %s2188_s0, 1024, %s177_s6, [#allocation4], %s1718_s17, %s1718_s17, %s1719_s18  }
  0x29   : > { %s203_s27 = sand.u32 1, %s1715_s21   ;;  %s205_s30 = sand.u32 1, %s1711_s20  }
  0x2a   : > { %s1849_s9 = sshll.u32 %s205_s30, 7  ;;  %s1087_s10 = sshll.u32 %s1715_s21, 11 }
  0x2b   : > { %s1857_s13 = scalar_lea.hbm %s2190_s2, %s1087_s10  ;;  %s207_s14 = scalar_lea.vmem [#allocation8], %s1849_s9 }
  0x2c   : > { %s214_s15 = sshll.u32 %s207_s14, 4  ;;  %s1720_s6 = smov [#allocation6]   ;;  %s1860_s15 = int_to_ptr.vmem [resolvable:$true] %s214_s15 }
  0x2d   : > { %s1862_s16 = sshll.u32 %s1720_s6, 4  ;;  %s1864_s17 = scalar_lea.sflag [#allocation4], %s203_s27  ;;  %s190_s16 = int_to_ptr.vmem [resolvable:$true] %s1862_s16 }
  0x2e   : > { %s1555_s18 = scalar_lea.hbm %s1857_s13, 2048  ;;  %p2206_p8 = scmp.ne.s32.totalorder %s2205_s8, 0 }
  0x2f   : > { %p1556_p5 = scmp.ne.s32.totalorder %s1857_s13, %s1555_s18  ;;  %s1560_s30 = scalar_lea.hbm %s2190_s2, 8192 }
  0x30   : > { %p2199_p9 = pneg %p2206_p8  ;;  %p1561_p1 = scmp.lt.u32.totalorder %s1857_s13, %s2190_s2 }
  0x31   : > { %p1562_p3 = scmp.lt.u32.totalorder %s1560_s30, %s1555_s18  ;;  %p1564_p4 = scmp.lt.u32.totalorder %s1555_s18, %s1857_s13 }
  0x32   : > { %p1558_p10 = pnand %p2199_p9, %p1556_p5 }
  0x33   : > { %p1563_p6 = por %p1562_p3, %p1561_p1 }
  0x34   : > { %p1559_p0 = pneg %p1558_p10 }
  0x35   : > { %p1565_p7 = por %p1564_p4, %p1563_p6 }
  0x37   : > { %p1566_p11 = pnand %p1565_p7, %p1559_p0 }
  0x39   : > { %1569 = shalt.err (!%p1566_p11)
}
  0x3a   : > { %s1570_s27 = scalar_lea.vmem %s1860_s15, 2048  ;;  %s1721_s14 = smov [#allocation8]  }
  0x3b   : > { %p1571_p13 = scmp.ne.s32.totalorder %s1860_s15, %s1570_s27  ;;  %s1575_s6 = sshll.u32 %s1721_s14, 4  ;;  %s1576_s6 = int_to_ptr.vmem [resolvable:$false] %s1575_s6 }
  0x3c   : > { %s1577_s24 = scalar_lea.vmem %s1576_s6, 4096  ;;  %p1578_p2 = scmp.lt.s32.totalorder %s1860_s15, %s1576_s6 }
  0x3d   : > { %p1573_p5 = pnand %p1571_p13, %p2199_p9  ;;  %p1579_p1 = scmp.lt.s32.totalorder %s1577_s24, %s1570_s27 }
  0x3f   : > { %p1574_p10 = pneg %p1573_p5  ;;  %p1580_p3 = por %p1579_p1, %p1578_p2 }
  0x41   : > { %p1581_p6 = pnand %p1580_p3, %p1574_p10 }
  0x43   : > { %1584 = shalt.err (!%p1581_p6)
}
  0x44   : > { %s1722_s18 = smov 128   ;;  %s1723_s25 = smov 8  }
  0x45   : > { %1435 = dma.hbm_to_vmem [thread:$0]  (!%p2206_p8), %s1857_s13, 2048, %s1860_s15, %s1864_s17, %s1722_s18, %s1722_s18, %s1723_s25  }
  0x46   : > { %s1585_s12 = scalar_lea.hbm %s2189_s1, 2048  ;;  %p2207_p0 = pneg %p1814_p12 }
  0x47   : > { %p1586_p2 = scmp.ne.s32.totalorder %s2189_s1, %s1585_s12  ;;  %p1592_p11 = scmp.lt.u32.totalorder %s1585_s12, %s2189_s1 }
  0x49   : > { %p1588_p4 = pnand %p1586_p2, %p2207_p0 }
  0x4b   : > { %p1589_p7 = pneg %p1588_p4 }
  0x4d   : > { %p1594_p13 = pnand %p1592_p11, %p1589_p7 }
  0x4f   : > { %1597 = shalt.err (!%p1594_p13)
}
  0x50   : > { %s1598_s13 = scalar_lea.vmem %s190_s16, 2048  ;;  %p2208_p10 = pmov %p2207_p0 }
  0x51   : > { %p1599_p5 = scmp.ne.s32.totalorder %s190_s16, %s1598_s13  ;;  %p1606_p6 = scmp.lt.s32.totalorder %s190_s16, %s190_s16 }
  0x52   : > { %p1607_p9 = scmp.lt.s32.totalorder %s1598_s13, %s1598_s13 }
  0x53   : > { %p1601_p1 = pnand %p1599_p5, %p2208_p10 }
  0x54   : > { %p1608_p8 = por %p1607_p9, %p1606_p6 }
  0x55   : > { %p1602_p3 = pneg %p1601_p1 }
  0x57   : > { %p1609_p0 = pnand %p1608_p8, %p1602_p3 }
  0x59   : > { %1612 = shalt.err (!%p1609_p0)
}
  0x5a   : > { %1431 = dma.hbm_to_vmem [thread:$0]  (!%p1814_p12), %s2189_s1, 2048, %s190_s16, [#allocation7], %s1722_s18, %s1722_s18, %s1723_s25  }
  0x5b   : > { %s1924_s27 = scalar_lea.hbm %s2191_s3, %s1087_s10  ;;  %s228_s7 = scalar_lea.vmem [#allocation9], %s1849_s9 }
  0x5c   : > { %s235_s14 = sshll.u32 %s228_s7, 4  ;;  %s1613_s6 = scalar_lea.hbm %s1924_s27, 2048  ;;  %s1927_s14 = int_to_ptr.vmem [resolvable:$true] %s235_s14 }
  0x5d   : > { %p1614_p8 = scmp.ne.s32.totalorder %s1924_s27, %s1613_s6  ;;  %p2209_p9 = scmp.ne.s32.totalorder %s2205_s8, 0 }
  0x5e   : > { %s1618_s24 = scalar_lea.hbm %s2191_s3, 8192  ;;  %p1619_p7 = scmp.lt.u32.totalorder %s1924_s27, %s2191_s3 }
  0x5f   : > { %p2210_p2 = pneg %p2209_p9  ;;  %p1620_p11 = scmp.lt.u32.totalorder %s1618_s24, %s1613_s6 }
  0x60   : > { %p1622_p5 = scmp.lt.u32.totalorder %s1613_s6, %s1924_s27 }
  0x61   : > { %p1616_p4 = pnand %p1614_p8, %p2210_p2  ;;  %p1621_p13 = por %p1620_p11, %p1619_p7 }
  0x63   : > { %p1617_p12 = pneg %p1616_p4  ;;  %p1623_p10 = por %p1622_p5, %p1621_p13 }
  0x65   : > { %p1624_p1 = pnand %p1623_p10, %p1617_p12 }
  0x67   : > { %1627 = shalt.err (!%p1624_p1)
}
  0x68   : > { %s1628_s9 = scalar_lea.vmem %s1927_s14, 2048  ;;  %p2211_p6 = pmov %p2210_p2 }
  0x69   : > { %p1629_p3 = scmp.ne.s32.totalorder %s1927_s14, %s1628_s9  ;;  %s1724_s15 = smov [#allocation9]  }
  0x6a   : > { %s1633_s30 = sshll.u32 %s1724_s15, 4  ;;  %s1634_s30 = int_to_ptr.vmem [resolvable:$false] %s1633_s30 }
  0x6b   : > { %p1631_p0 = pnand %p1629_p3, %p2211_p6  ;;  %s1635_s11 = scalar_lea.vmem %s1634_s30, 4096 }
  0x6c   : > { %p1636_p2 = scmp.lt.s32.totalorder %s1927_s14, %s1634_s30  ;;  %p1637_p4 = scmp.lt.s32.totalorder %s1635_s11, %s1628_s9 }
  0x6d   : > { %p1632_p8 = pneg %p1631_p0 }
  0x6e   : > { %p1638_p7 = por %p1637_p4, %p1636_p2 }
  0x70   : > { %p1639_p11 = pnand %p1638_p7, %p1632_p8 }
  0x72   : > { %1642 = shalt.err (!%p1639_p11)
}
  0x73   : > { %1438 = dma.hbm_to_vmem [thread:$0]  (!%p2209_p9), %s1924_s27, 2048, %s1927_s14, %s1864_s17, %s1722_s18, %s1722_s18, %s1723_s25  }
  0x74   : > { %p2212_p12 = scmp.ne.s32.totalorder %s2203_s29, 0 }
  0x75   : > { %p2213_p13 = scmp.eq.s32.totalorder (!%p2212_p12), %s1777_s22, 0 }
  0x76   : > { %253 = sbr.rel (%p2212_p12) target bundleno = 714 (0x2ca), region = 40 }
  0x7d   : > { %1686 = dma.done.wait (%p2213_p13), [#allocation4], 1024   ;;  %p2214_p5 = pmov %p2213_p13 }
  0x7f   : > { %1688 = vsyncadd (%p2214_p5), [#allocation4], 4294966272  ;;  %p2215_p10 = pmov %p2214_p5 }
  0x80   : > { %p2216_p1 = pmov %p2214_p5 }
  0x81   : > { %1690 = dma.done.wait (%p2215_p10), [#allocation7], 2048  }
  0x82   : > { %1692 = vsyncadd (%p2216_p1), [#allocation7], 4294965248  ;;  %s263_s8 = sand.u32 1, %s1777_s22   ;;  %s265_s17 = sand.u32 1, %s1707_s19  }
  0x83   : > { %s1069_s18 = sshll.u32 %s265_s17, 7  ;;  %s264_s29 = scalar_lea.sflag [#allocation4], %s263_s8 }
  0x84   : > { %s1968_s25 = scalar_lea.vmem [#allocation8], %s1069_s18  ;;  %p2217_p9 = scmp.ne.s32.totalorder %s2202_s28, 0 }
  0x86   : > { %1694 = dma.done.wait (%p2217_p9), %s264_s29, 4096  }
  0x87   : > { %1696 = vsyncadd (%p2217_p9), %s264_s29, 4294963200  ;;  %p306_p3 = scmp.lt.s32.totalorder %s1777_s22, 3  ;;  %s1982_s6 = scalar_lea.vmem [#allocation9], %s1069_s18 }
  0x88   : > { %p2218_p6 = scmp.ne.s32.totalorder %s1777_s22, 0 }
  0x89   : > { %s1976_s12 = scalar_select %p306_p3, %s1777_s22, 3 }
  0x8a   : > { %314 = sbr.rel (%p2218_p6) target bundleno = 147 (0x93), region = 60  ;;  %v315_v0 = vld [vmem:[#allocation6] sm:$0xff] (!%p2218_p6)  ;;  %v316_v1 = vld [vmem:[#allocation6 + $0x8] sm:$0xff] (!%p2218_p6)  ;;  %v317_v2 = vld [vmem:[#allocation6 + $0x10] sm:$0xff] (!%p2218_p6) }
  0x8b   : > { %s308_s14 = scalar_lea.vmem %s2192_s4, %s1976_s12  ;;  %331 = vst [vmem:[#allocation2] sm:$0xff] (!%p2218_p6), %v315_v0  ;;  %332 = vst [vmem:[#allocation2 + $0x8] sm:$0xff] (!%p2218_p6), %v316_v1  ;;  %v318_v3 = vld [vmem:[#allocation6 + $0x18] sm:$0xff] (!%p2218_p6)  ;;  %v319_v4 = vld [vmem:[#allocation6 + $0x20] sm:$0xff] (!%p2218_p6) }
  0x8c   : > { %333 = vst [vmem:[#allocation2 + $0x10] sm:$0xff] (!%p2218_p6), %v317_v2  ;;  %v320_v5 = vld [vmem:[#allocation6 + $0x28] sm:$0xff] (!%p2218_p6)  ;;  %334 = vst [vmem:[#allocation2 + $0x18] sm:$0xff] (!%p2218_p6), %v318_v3  ;;  %v321_v6 = vld [vmem:[#allocation6 + $0x30] sm:$0xff] (!%p2218_p6) }
  0x8d   : > { %335 = vst [vmem:[#allocation2 + $0x20] sm:$0xff] (!%p2218_p6), %v319_v4  ;;  %336 = vst [vmem:[#allocation2 + $0x28] sm:$0xff] (!%p2218_p6), %v320_v5  ;;  %v322_v7 = vld [vmem:[#allocation6 + $0x38] sm:$0xff] (!%p2218_p6)  ;;  %v323_v8 = vld [vmem:[#allocation6 + $0x40] sm:$0xff] (!%p2218_p6) }
  0x8e   : > { %337 = vst [vmem:[#allocation2 + $0x30] sm:$0xff] (!%p2218_p6), %v321_v6  ;;  %338 = vst [vmem:[#allocation2 + $0x38] sm:$0xff] (!%p2218_p6), %v322_v7  ;;  %v324_v9 = vld [vmem:[#allocation6 + $0x48] sm:$0xff] (!%p2218_p6)  ;;  %v325_v10 = vld [vmem:[#allocation6 + $0x50] sm:$0xff] (!%p2218_p6) }
  0x8f   : > { %339 = vst [vmem:[#allocation2 + $0x40] sm:$0xff] (!%p2218_p6), %v323_v8  ;;  %v326_v11 = vld [vmem:[#allocation6 + $0x58] sm:$0xff] (!%p2218_p6)  ;;  %340 = vst [vmem:[#allocation2 + $0x48] sm:$0xff] (!%p2218_p6), %v324_v9  ;;  %v327_v12 = vld [vmem:[#allocation6 + $0x60] sm:$0xff] (!%p2218_p6) }
  0x90   : > { %341 = vst [vmem:[#allocation2 + $0x50] sm:$0xff] (!%p2218_p6), %v325_v10  ;;  %342 = vst [vmem:[#allocation2 + $0x58] sm:$0xff] (!%p2218_p6), %v326_v11  ;;  %v328_v13 = vld [vmem:[#allocation6 + $0x68] sm:$0xff] (!%p2218_p6)  ;;  %v329_v14 = vld [vmem:[#allocation6 + $0x70] sm:$0xff] (!%p2218_p6) }
  0x91   : > { %343 = vst [vmem:[#allocation2 + $0x60] sm:$0xff] %v327_v12  ;;  %344 = vst [vmem:[#allocation2 + $0x68] sm:$0xff] %v328_v13  ;;  %v330_v15 = vld [vmem:[#allocation6 + $0x78] sm:$0xff] }
  0x92   : > { %345 = vst [vmem:[#allocation2 + $0x70] sm:$0xff] %v329_v14  ;;  %346 = vst [vmem:[#allocation2 + $0x78] sm:$0xff] %v330_v15 }
  0x93 PF: > { %v1487_v27 = vld [vmem:[#allocation3] sm:$0xff]   ;;  %v549_v33 = vld [vmem:[%s1982_s6 + $0x8] sm:$0xff]  ;;  %v550_v37 = vld [vmem:[%s1982_s6 + $0x10] sm:$0xff]  ;;  %p1081_p0 = scmp.eq.s32.totalorder %s1777_s22, 3 }
  0x94   : > { %v1986_v16 = vld [vmem:[#allocation2] sm:$0xff]  ;;  %v1988_v17 = vld [vmem:[#allocation2 + $0x8] sm:$0xff]  ;;  %1185 = vmatprep.mubr.bf16.mxu0 %v1487_v27  ;;  %v551_v38 = vld [vmem:[%s1982_s6 + $0x18] sm:$0xff] }
  0x95   : > { %v1990_v18 = vld [vmem:[#allocation2 + $0x10] sm:$0xff]  ;;  %v379_v19 = vpack.c.bf16 %v1988_v17, %v1986_v16  ;;  %v1994_v20 = vld [vmem:[#allocation2 + $0x18] sm:$0xff]  ;;  %v548_v32 = vld [vmem:[%s1982_s6] sm:$0xff]  ;;  %v1317_v39 = vpack.c.bf16 %v551_v38, %v550_v37 }
  0x96   : > { %v380_v21 = vpack.c.bf16 %v1994_v20, %v1990_v18  ;;  %v1998_v22 = vld [vmem:[#allocation2 + $0x20] sm:$0xff]  ;;  %v2000_v23 = vld [vmem:[#allocation2 + $0x28] sm:$0xff]  ;;  %v1313_v36 = vpack.c.bf16 %v549_v33, %v548_v32  ;;  %v554_v46 = vld [vmem:[%s1982_s6 + $0x30] sm:$0xff] }
  0x97   : > { %1169 = vmatprep.subr.bf16.mxu0 %v379_v19  ;;  %v2002_v24 = vld [vmem:[#allocation2 + $0x30] sm:$0xff]  ;;  %v381_v25 = vpack.c.bf16 %v2000_v23, %v1998_v22  ;;  %v2006_v26 = vld [vmem:[#allocation2 + $0x38] sm:$0xff]  ;;  %v552_v40 = vld [vmem:[%s1982_s6 + $0x20] sm:$0xff] }
  0x98   : > { %1170 = vmatpush3.bf16.msra.mxu0 %v379_v19  ;;  %v382_v28 = vpack.c.bf16 %v2006_v26, %v2002_v24  ;;  %v2010_v29 = vld [vmem:[#allocation2 + $0x40] sm:$0xff]  ;;  %v2012_v30 = vld [vmem:[#allocation2 + $0x48] sm:$0xff]  ;;  %1314 = vmatprep.subr.bf16.mxu1 %v1313_v36  ;;  %v555_v47 = vld [vmem:[%s1982_s6 + $0x38] sm:$0xff] }
  0x99   : > { %1171 = vmatprep.subr.bf16.mxu0 %v380_v21  ;;  %v383_v31 = vpack.c.bf16 %v2012_v30, %v2010_v29  ;;  %v2018_v34 = vld [vmem:[#allocation2 + $0x50] sm:$0xff]  ;;  %v2020_v35 = vld [vmem:[#allocation2 + $0x58] sm:$0xff]  ;;  %v553_v41 = vld [vmem:[%s1982_s6 + $0x28] sm:$0xff]  ;;  %1316 = vmatpush3.bf16.msra.mxu1 %v1313_v36  ;;  %v1325_v51 = vpack.c.bf16 %v555_v47, %v554_v46 }
  0x9a   : > { %v384_v42 = vpack.c.bf16 %v2020_v35, %v2018_v34  ;;  %v2028_v43 = vld [vmem:[#allocation2 + $0x60] sm:$0xff]  ;;  %v2030_v44 = vld [vmem:[#allocation2 + $0x68] sm:$0xff]  ;;  %1318 = vmatprep.subr.bf16.mxu1 %v1317_v39  ;;  %v1321_v45 = vpack.c.bf16 %v553_v41, %v552_v40  ;;  %v2036_v49 = vld [vmem:[#allocation2 + $0x70] sm:$0xff] }
  0x9b   : > { %v385_v48 = vpack.c.bf16 %v2030_v44, %v2028_v43  ;;  %v2038_v50 = vld [vmem:[#allocation2 + $0x78] sm:$0xff]  ;;  %v556_v52 = vld [vmem:[%s1982_s6 + $0x40] sm:$0xff]  ;;  %v557_v53 = vld [vmem:[%s1982_s6 + $0x48] sm:$0xff] }
  0x9c   : > { %1172 = vmatpush3.bf16.msra.mxu0 %v380_v21  ;;  %v386_v54 = vpack.c.bf16 %v2038_v50, %v2036_v49  ;;  %v532_v55 = vld [vmem:[%s1968_s25] sm:$0xff]  ;;  %v533_v56 = vld [vmem:[%s1968_s25 + $0x8] sm:$0xff]  ;;  %v1329_v57 = vpack.c.bf16 %v557_v53, %v556_v52  ;;  %v558_v58 = vld [vmem:[%s1982_s6 + $0x50] sm:$0xff] }
  0x9d   : > { %1173 = vmatprep.subr.bf16.mxu0 %v381_v25  ;;  %1320 = vmatpush3.bf16.msra.mxu1 %v1317_v39  ;;  %v559_v59 = vld [vmem:[%s1982_s6 + $0x58] sm:$0xff]  ;;  %v2048_v60 = vpack.c.bf16 %v533_v56, %v532_v55  ;;  %v534_v61 = vld [vmem:[%s1968_s25 + $0x10] sm:$0xff]  ;;  %v1488_v0 = vld [vmem:[#allocation3 + $0x8] sm:$0xff]  }
  0x9e   : > { %1322 = vmatprep.subr.bf16.mxu1 %v1321_v45  ;;  %v535_v62 = vld [vmem:[%s1968_s25 + $0x18] sm:$0xff]  ;;  %v1333_v63 = vpack.c.bf16 %v559_v59, %v558_v58  ;;  %v560_v1 = vld [vmem:[%s1982_s6 + $0x60] sm:$0xff]  ;;  %v561_v2 = vld [vmem:[%s1982_s6 + $0x68] sm:$0xff] }
  0x9f   : > { %v1489_v3 = vld [vmem:[#allocation3 + $0x10] sm:$0xff]   ;;  %v2055_v4 = vpack.c.bf16 %v535_v62, %v534_v61  ;;  %v536_v5 = vld [vmem:[%s1968_s25 + $0x20] sm:$0xff]  ;;  %v537_v6 = vld [vmem:[%s1968_s25 + $0x28] sm:$0xff]  ;;  %v1337_v7 = vpack.c.bf16 %v561_v2, %v560_v1 }
  0xa0   : > { %1174 = vmatpush3.bf16.msra.mxu0 %v381_v25  ;;  %v562_v8 = vld [vmem:[%s1982_s6 + $0x70] sm:$0xff]  ;;  %v563_v9 = vld [vmem:[%s1982_s6 + $0x78] sm:$0xff]  ;;  %v2063_v10 = vpack.c.bf16 %v537_v6, %v536_v5  ;;  %v1491_v15 = vld [vmem:[#allocation3 + $0x20] sm:$0xff]  }
  0xa1   : > { %1175 = vmatprep.subr.bf16.mxu0 %v382_v28  ;;  %1324 = vmatpush3.bf16.msra.mxu1 %v1321_v45  ;;  %v538_v11 = vld [vmem:[%s1968_s25 + $0x30] sm:$0xff]  ;;  %v539_v12 = vld [vmem:[%s1968_s25 + $0x38] sm:$0xff]  ;;  %v1341_v13 = vpack.c.bf16 %v563_v9, %v562_v8  ;;  %v540_v21 = vld [vmem:[%s1968_s25 + $0x40] sm:$0xff] }
  0xa2   : > { %1326 = vmatprep.subr.bf16.mxu1 %v1325_v51  ;;  %v1490_v14 = vld [vmem:[#allocation3 + $0x18] sm:$0xff]   ;;  %v2069_v19 = vpack.c.bf16 %v539_v12, %v538_v11  ;;  %v541_v25 = vld [vmem:[%s1968_s25 + $0x48] sm:$0xff]  ;;  %v1493_v33 = vld [vmem:[#allocation3 + $0x30] sm:$0xff]  }
  0xa3   : > { %v2075_v27 = vpack.c.bf16 %v541_v25, %v540_v21  ;;  %v1492_v32 = vld [vmem:[#allocation3 + $0x28] sm:$0xff]   ;;  %v544_v37 = vld [vmem:[%s1968_s25 + $0x60] sm:$0xff]  ;;  %v1494_v40 = vld [vmem:[#allocation3 + $0x38] sm:$0xff]  }
  0xa4   : > { %1176 = vmatpush3.bf16.msra.mxu0 %v382_v28  ;;  %v542_v28 = vld [vmem:[%s1968_s25 + $0x50] sm:$0xff]  ;;  %v545_v38 = vld [vmem:[%s1968_s25 + $0x68] sm:$0xff] }
  0xa5   : > { %1177 = vmatprep.subr.bf16.mxu0 %v383_v31  ;;  %1328 = vmatpush3.bf16.msra.mxu1 %v1325_v51  ;;  %v1369_v39 = vpack.c.bf16 %v545_v38, %v544_v37  ;;  %v546_v41 = vld [vmem:[%s1968_s25 + $0x70] sm:$0xff] }
  0xa6   : > { %1330 = vmatprep.subr.bf16.mxu1 %v1329_v57 }
  0xa8   : > { %1178 = vmatpush3.bf16.msra.mxu0 %v383_v31  ;;  %v543_v31 = vld [vmem:[%s1968_s25 + $0x58] sm:$0xff] }
  0xa9   : > { %1179 = vmatprep.subr.bf16.mxu0 %v384_v42  ;;  %1332 = vmatpush3.bf16.msra.mxu1 %v1329_v57  ;;  %v1365_v36 = vpack.c.bf16 %v543_v31, %v542_v28 }
  0xaa   : > { %1334 = vmatprep.subr.bf16.mxu1 %v1333_v63 }
  0xac   : > { %1180 = vmatpush3.bf16.msra.mxu0 %v384_v42  ;;  %v547_v42 = vld [vmem:[%s1968_s25 + $0x78] sm:$0xff] }
  0xad   : > { %1181 = vmatprep.subr.bf16.mxu0 %v385_v48  ;;  %1336 = vmatpush3.bf16.msra.mxu1 %v1333_v63  ;;  %v1373_v45 = vpack.c.bf16 %v547_v42, %v546_v41 }
  0xae   : > { %1338 = vmatprep.subr.bf16.mxu1 %v1337_v7 }
  0xb0   : > { %1182 = vmatpush3.bf16.msra.mxu0 %v385_v48 }
  0xb1   : > { %1183 = vmatprep.subr.bf16.mxu0 %v386_v54  ;;  %1340 = vmatpush3.bf16.msra.mxu1 %v1337_v7 }
  0xb2   : > { %1342 = vmatprep.subr.bf16.mxu1 %v1341_v13 }
  0xb4   : > { %1184 = vmatpush3.bf16.msra.mxu0 %v386_v54 }
  0xb5   : > { %1346 = vmatprep.subr.bf16.mxu0 %v2048_v60  ;;  %1344 = vmatpush3.bf16.msra.mxu1 %v1341_v13 }
  0xb6   : > { %1377 = vmatprep.subr.bf16.mxu1 %v2048_v60 }
  0xb7   : > { %1186 = vmatmul.mubr.bf16.vlgmr.msra.gmra.mrb[0].mxu0 %v1488_v0 }
  0xb8   : > { %1189 = vmatprep.mubr.bf16.mxu0 %v1489_v3  ;;  %1348 = vmatpush3.bf16.msra.mxu0 %v2048_v60 }
  0xb9   : > { %1350 = vmatprep.subr.bf16.mxu0 %v2055_v4 }
  0xbc   : > { %1352 = vmatpush3.bf16.msra.mxu0 %v2055_v4 }
  0xbd   : > { %1354 = vmatprep.subr.bf16.mxu0 %v2063_v10 }
  0xbf   : > { %1190 = vmatmul.mubr.bf16.gmra.mrb[4].mxu0 %v1490_v14 }
  0xc0   : > { %1193 = vmatprep.mubr.bf16.mxu0 %v1491_v15  ;;  %1356 = vmatpush3.bf16.msra.mxu0 %v2063_v10 }
  0xc1   : > { %1358 = vmatprep.subr.bf16.mxu0 %v2069_v19 }
  0xc4   : > { %1360 = vmatpush3.bf16.msra.mxu0 %v2069_v19 }
  0xc5   : > { %1362 = vmatprep.subr.bf16.mxu0 %v2075_v27 }
  0xc7   : > { %1194 = vmatmul.mubr.bf16.gmra.mrb[8].mxu0 %v1492_v32 }
  0xc8   : > { %1197 = vmatprep.mubr.bf16.mxu0 %v1493_v33  ;;  %1364 = vmatpush3.bf16.msra.mxu0 %v2075_v27 }
  0xc9   : > { %1366 = vmatprep.subr.bf16.mxu0 %v1365_v36 }
  0xcc   : > { %1368 = vmatpush3.bf16.msra.mxu0 %v1365_v36 }
  0xcd   : > { %1370 = vmatprep.subr.bf16.mxu0 %v1369_v39 }
  0xcf   : > { %1198 = vmatmul.mubr.bf16.gmra.mrb[12].mxu0 %v1494_v40 }
  0xd0   : > { %1372 = vmatpush3.bf16.msra.mxu0 %v1369_v39  ;;  %1289 = vmatprep.mubr.f32.mxu0 %v1986_v16 }
  0xd1   : > { %1374 = vmatprep.subr.bf16.mxu0 %v1373_v45 }
  0xd4   : > { %1376 = vmatpush3.bf16.msra.mxu0 %v1373_v45 }
  0xd7   : > { %1290 = vmatmul.mubr.f32.vlgmr.msra.gmra.mrb[16].mxu0 %v1988_v17 }
  0xd8   : > { %1292 = vmatprep.mubr.f32.mxu0 %v1990_v18 }
  0xdb   : > { %1293 = vmatmul.mubr.f32.gmra.mrb[18].mxu0 %v1994_v20 }
  0xdc   : > { %1295 = vmatprep.mubr.f32.mxu0 %v1998_v22 }
  0xdf   : > { %1296 = vmatmul.mubr.f32.gmra.mrb[20].mxu0 %v2000_v23 }
  0xe0   : > { %1298 = vmatprep.mubr.f32.mxu0 %v2002_v24 }
  0xe3   : > { %1299 = vmatmul.mubr.f32.gmra.mrb[22].mxu0 %v2006_v26 }
 0x18a   : > { %v1187_v16 = vpop.f32.mrb[0].mxu0 }
 0x18b   : > { %v469_v46 = vpop.f32.mrb[1].mxu0 }
 0x18c   : > { %v1188_v47 = vpop.f32.mrb[2].mxu0  ;;  %1233 = vmatprep.mubr.f32.mxu1 %v469_v46 }
 0x18d   : > { %v472_v48 = vpop.f32.mrb[3].mxu0 }
 0x18e   : > { %1234 = vmatmul.mubr.f32.vlgmr.msra.gmra.mrb[0].mxu1 %v472_v48 }
 0x18f   : > { %1385 = vmatpush3.bf16.msra.mxu1 %v2048_v60  ;;  %1236 = vmatprep.mubr.f32.mxu1 %v1187_v16 }
 0x190   : > { %1378 = vmatprep.subr.bf16.mxu1 %v2055_v4 }
 0x192   : > { %v1191_v17 = vpop.f32.mrb[4].mxu0  ;;  %1237 = vmatmul.mubr.f32.gmra.mrb[2].mxu1 %v1188_v47 }
 0x193   : > { %1386 = vmatpush3.bf16.msra.mxu1 %v2055_v4  ;;  %v485_v18 = vpop.f32.mrb[5].mxu0 }
 0x194   : > { %v1192_v20 = vpop.f32.mrb[6].mxu0  ;;  %1239 = vmatprep.mubr.f32.mxu1 %v485_v18  ;;  %1379 = vmatprep.subr.bf16.mxu1 %v2063_v10 }
 0x195   : > { %v488_v22 = vpop.f32.mrb[7].mxu0 }
 0x196   : > { %1240 = vmatmul.mubr.f32.gmra.mrb[4].mxu1 %v488_v22 }
 0x197   : > { %1387 = vmatpush3.bf16.msra.mxu1 %v2063_v10  ;;  %1242 = vmatprep.mubr.f32.mxu1 %v1191_v17 }
 0x198   : > { %1380 = vmatprep.subr.bf16.mxu1 %v2069_v19 }
 0x19a   : > { %v1195_v23 = vpop.f32.mrb[8].mxu0  ;;  %1243 = vmatmul.mubr.f32.gmra.mrb[6].mxu1 %v1192_v20 }
 0x19b   : > { %1388 = vmatpush3.bf16.msra.mxu1 %v2069_v19  ;;  %v501_v24 = vpop.f32.mrb[9].mxu0 }
 0x19c   : > { %v1196_v26 = vpop.f32.mrb[10].mxu0  ;;  %1245 = vmatprep.mubr.f32.mxu1 %v501_v24  ;;  %1381 = vmatprep.subr.bf16.mxu1 %v2075_v27 }
 0x19d   : > { %v504_v51 = vpop.f32.mrb[11].mxu0 }
 0x19e   : > { %1246 = vmatmul.mubr.f32.gmra.mrb[8].mxu1 %v504_v51 }
 0x19f   : > { %1389 = vmatpush3.bf16.msra.mxu1 %v2075_v27  ;;  %1248 = vmatprep.mubr.f32.mxu1 %v1195_v23 }
 0x1a0   : > { %1382 = vmatprep.subr.bf16.mxu1 %v1365_v36 }
 0x1a2   : > { %v1199_v52 = vpop.f32.mrb[12].mxu0  ;;  %1249 = vmatmul.mubr.f32.gmra.mrb[10].mxu1 %v1196_v26 }
 0x1a3   : > { %1390 = vmatpush3.bf16.msra.mxu1 %v1365_v36  ;;  %v517_v53 = vpop.f32.mrb[13].mxu0 }
 0x1a4   : > { %v1200_v54 = vpop.f32.mrb[14].mxu0  ;;  %1251 = vmatprep.mubr.f32.mxu1 %v517_v53  ;;  %1383 = vmatprep.subr.bf16.mxu1 %v1369_v39 }
 0x1a5   : > { %v520_v55 = vpop.f32.mrb[15].mxu0 }
 0x1a6   : > { %1252 = vmatmul.mubr.f32.gmra.mrb[12].mxu1 %v520_v55 }
 0x1a7   : > { %1391 = vmatpush3.bf16.msra.mxu1 %v1369_v39  ;;  %1254 = vmatprep.mubr.f32.mxu1 %v1199_v52 }
 0x1a8   : > { %1384 = vmatprep.subr.bf16.mxu1 %v1373_v45 }
 0x1aa   : > { %1255 = vmatmul.mubr.f32.gmra.mrb[14].mxu1 %v1200_v54  ;;  %v1291_v56 = vpop.f32.mrb[16].mxu0 }
 0x1ab   : > { %1392 = vmatpush3.bf16.msra.mxu1 %v1373_v45  ;;  %1301 = vmatprep.mubr.f32.mxu1 %v2010_v29  ;;  %v775_v57 = vpop.f32.mrb[17].mxu0 }
 0x1ae   : > { %1302 = vmatmul.mubr.f32.vlgmr.msra.gmra.mrb[8].mxu1 %v2012_v30  ;;  %v1294_v58 = vpop.f32.mrb[18].mxu0 }
 0x1af   : > { %1304 = vmatprep.mubr.f32.mxu1 %v2018_v34  ;;  %v785_v59 = vpop.f32.mrb[19].mxu0  ;;  %v1080_v34 = vld [vmem:[%s308_s14] ss:$0 sm:$0xff] }
 0x1b2   : > { %1305 = vmatmul.mubr.f32.gmra.mrb[10].mxu1 %v2020_v35  ;;  %v1297_v29 = vpop.f32.mrb[20].mxu0 }
 0x1b3   : > { %1307 = vmatprep.mubr.f32.mxu1 %v2028_v43  ;;  %v795_v60 = vpop.f32.mrb[21].mxu0 }
 0x1b6   : > { %1308 = vmatmul.mubr.f32.gmra.mrb[12].mxu1 %v2030_v44  ;;  %v1300_v30 = vpop.f32.mrb[22].mxu0 }
 0x1b7   : > { %1310 = vmatprep.mubr.f32.mxu1 %v2036_v49  ;;  %v805_v61 = vpop.f32.mrb[23].mxu0 }
 0x1ba   : > { %1311 = vmatmul.mubr.f32.gmra.mrb[14].mxu1 %v2038_v50 }
 0x261   : > { %v1235_v62 = vpop.f32.mrb[0].mxu1 }
 0x262   : > { %v781_v35 = vadd.f32 %v1291_v56, %v1235_v62  ;;  %v630_v43 = vpop.f32.mrb[1].mxu1 }
 0x263   : > { %v776_v44 = vadd.f32 %v775_v57, %v630_v43 }
 0x264   : > { %v2117_v49 = vadd.f32 %v1080_v34, %v781_v35 }
 0x265   : > { %v2119_v50 = vadd.f32 %v1080_v34, %v776_v44  ;;  %v1238_v63 = vpop.f32.mrb[2].mxu1 }
 0x266   : > { %v791_v0 = vadd.f32 %v1294_v58, %v1238_v63  ;;  %v640_v1 = vpop.f32.mrb[3].mxu1  ;;  %v882_v47 = vmax.f32 (!%p1081_p0), %v2117_v49, 0.0 }
 0x267   : > { %v786_v2 = vadd.f32 %v785_v59, %v640_v1  ;;  %v881_v46 = vmax.f32 (!%p1081_p0), %v2119_v50, 0.0 }
 0x268   : > { %v2121_v3 = vadd.f32 %v1080_v34, %v791_v0  ;;  %898 = vst [vmem:[#allocation2 + $0x8] sm:$0xff] (!%p1081_p0), %v882_v47 }
 0x269   : > { %v2123_v4 = vadd.f32 %v1080_v34, %v786_v2  ;;  %v1241_v5 = vpop.f32.mrb[4].mxu1  ;;  %897 = vst [vmem:[#allocation2] sm:$0xff] (!%p1081_p0), %v881_v46 }
 0x26a   : > { %v801_v6 = vadd.f32 %v1297_v29, %v1241_v5  ;;  %v650_v7 = vpop.f32.mrb[5].mxu1  ;;  %v884_v17 = vmax.f32 (!%p1081_p0), %v2121_v3, 0.0 }
 0x26b   : > { %v796_v8 = vadd.f32 %v795_v60, %v650_v7  ;;  %v883_v48 = vmax.f32 (!%p1081_p0), %v2123_v4, 0.0 }
 0x26c   : > { %v2125_v9 = vadd.f32 %v1080_v34, %v801_v6  ;;  %900 = vst [vmem:[#allocation2 + $0x18] sm:$0xff] (!%p1081_p0), %v884_v17 }
 0x26d   : > { %v2127_v10 = vadd.f32 %v1080_v34, %v796_v8  ;;  %v1244_v11 = vpop.f32.mrb[6].mxu1  ;;  %899 = vst [vmem:[#allocation2 + $0x10] sm:$0xff] (!%p1081_p0), %v883_v48 }
 0x26e   : > { %v811_v12 = vadd.f32 %v1300_v30, %v1244_v11  ;;  %v660_v13 = vpop.f32.mrb[7].mxu1  ;;  %v886_v20 = vmax.f32 (!%p1081_p0), %v2125_v9, 0.0 }
 0x26f   : > { %v806_v14 = vadd.f32 %v805_v61, %v660_v13  ;;  %v885_v18 = vmax.f32 (!%p1081_p0), %v2127_v10, 0.0 }
 0x270   : > { %v868_v15 = vadd.f32 %v1080_v34, %v811_v12  ;;  %902 = vst [vmem:[#allocation2 + $0x28] sm:$0xff] (!%p1081_p0), %v886_v20 }
 0x271   : > { %v867_v19 = vadd.f32 %v1080_v34, %v806_v14  ;;  %901 = vst [vmem:[#allocation2 + $0x20] sm:$0xff] (!%p1081_p0), %v885_v18 }
 0x272   : > { %v888_v23 = vmax.f32 (!%p1081_p0), %v868_v15, 0.0 }
 0x273   : > { %v887_v22 = vmax.f32 (!%p1081_p0), %v867_v19, 0.0 }
 0x274   : > { %904 = vst [vmem:[#allocation2 + $0x38] sm:$0xff] (!%p1081_p0), %v888_v23 }
 0x275   : > { %903 = vst [vmem:[#allocation2 + $0x30] sm:$0xff] (!%p1081_p0), %v887_v22 }
 0x281   : > { %v1303_v21 = vpop.f32.mrb[8].mxu1 }
 0x282   : > { %v870_v25 = vadd.f32 %v1303_v21, %v1080_v34  ;;  %v815_v27 = vpop.f32.mrb[9].mxu1 }
 0x283   : > { %v869_v28 = vadd.f32 %v1080_v34, %v815_v27 }
 0x284   : > { %v890_v26 = vmax.f32 (!%p1081_p0), %v870_v25, 0.0 }
 0x285   : > { %v1306_v31 = vpop.f32.mrb[10].mxu1  ;;  %v889_v24 = vmax.f32 (!%p1081_p0), %v869_v28, 0.0 }
 0x286   : > { %v872_v32 = vadd.f32 %v1306_v31, %v1080_v34  ;;  %v825_v33 = vpop.f32.mrb[11].mxu1  ;;  %906 = vst [vmem:[#allocation2 + $0x48] sm:$0xff] (!%p1081_p0), %v890_v26 }
 0x287   : > { %v871_v36 = vadd.f32 %v1080_v34, %v825_v33  ;;  %905 = vst [vmem:[#allocation2 + $0x40] sm:$0xff] (!%p1081_p0), %v889_v24 }
 0x288   : > { %v892_v52 = vmax.f32 (!%p1081_p0), %v872_v32, 0.0 }
 0x289   : > { %v1309_v37 = vpop.f32.mrb[12].mxu1  ;;  %880 = sbr.rel (%p1081_p0) target bundleno = 660 (0x294), region = 64  ;;  %v891_v51 = vmax.f32 (!%p1081_p0), %v871_v36, 0.0 }
 0x28a   : > { %v2129_v38 = vadd.f32 %v1309_v37, %v1080_v34  ;;  %v835_v39 = vpop.f32.mrb[13].mxu1  ;;  %908 = vst [vmem:[#allocation2 + $0x58] sm:$0xff] (!%p1081_p0), %v892_v52 }
 0x28b   : > { %v873_v40 = vadd.f32 %v1080_v34, %v835_v39  ;;  %907 = vst [vmem:[#allocation2 + $0x50] sm:$0xff] (!%p1081_p0), %v891_v51 }
 0x28c   : > { %v894_v54 = vmax.f32 (!%p1081_p0), %v2129_v38, 0.0 }
 0x28d   : > { %v1312_v41 = vpop.f32.mrb[14].mxu1  ;;  %v893_v53 = vmax.f32 (!%p1081_p0), %v873_v40, 0.0 }
 0x28e   : > { %v2131_v42 = vadd.f32 %v1312_v41, %v1080_v34  ;;  %v845_v45 = vpop.f32.mrb[15].mxu1  ;;  %910 = vst [vmem:[#allocation2 + $0x68] sm:$0xff] (!%p1081_p0), %v894_v54 }
 0x28f   : > { %v875_v16 = vadd.f32 %v1080_v34, %v845_v45  ;;  %909 = vst [vmem:[#allocation2 + $0x60] sm:$0xff] (!%p1081_p0), %v893_v53 }
 0x290   : > { %v896_v56 = vmax.f32 %v2131_v42, 0.0 }
 0x291   : > { %v895_v55 = vmax.f32 %v875_v16, 0.0 }
 0x292   : > { %912 = vst [vmem:[#allocation2 + $0x78] sm:$0xff] %v896_v56 }
 0x293   : > { %911 = vst [vmem:[#allocation2 + $0x70] sm:$0xff] %v895_v55 }
 0x294 PF: > { %p1082_p8 = scmp.ne.s32.totalorder %s1777_s22, 3 }
 0x295   : > { %1495 = vtanh.f32 (!%p1082_p8), %v2119_v50 }
 0x296   : > { %915 = sbr.rel (%p1082_p8) target bundleno = 688 (0x2b0), region = 68  ;;  %1497 = vtanh.f32 (!%p1082_p8), %v2117_v49 }
 0x297   : > { %1499 = vtanh.f32 (!%p1082_p8), %v2123_v4 }
 0x298   : > { %1501 = vtanh.f32 (!%p1082_p8), %v2121_v3 }
 0x299   : > { %1503 = vtanh.f32 (!%p1082_p8), %v2127_v10 }
 0x29a   : > { %1505 = vtanh.f32 (!%p1082_p8), %v2125_v9 }
 0x29b   : > { %1507 = vtanh.f32 (!%p1082_p8), %v867_v19 }
 0x29c   : > { %1509 = vtanh.f32 (!%p1082_p8), %v868_v15 }
 0x29d   : > { %1511 = vtanh.f32 %v869_v28 }
 0x29e   : > { %1513 = vtanh.f32 %v870_v25 }
 0x29f   : > { %v1496_v57 = vpop.eup %1495  ;;  %1515 = vtanh.f32 %v871_v36 }
 0x2a0   : > { %v1498_v58 = vpop.eup %1497  ;;  %932 = vst [vmem:[#allocation10] sm:$0xff] %v1496_v57  ;;  %1517 = vtanh.f32 %v872_v32 }
 0x2a1   : > { %v1500_v59 = vpop.eup %1499  ;;  %933 = vst [vmem:[#allocation10 + $0x8] sm:$0xff] %v1498_v58  ;;  %1519 = vtanh.f32 %v873_v40 }
 0x2a2   : > { %v1502_v29 = vpop.eup %1501  ;;  %934 = vst [vmem:[#allocation10 + $0x10] sm:$0xff] %v1500_v59  ;;  %1521 = vtanh.f32 %v2129_v38 }
 0x2a3   : > { %v1504_v60 = vpop.eup %1503  ;;  %935 = vst [vmem:[#allocation10 + $0x18] sm:$0xff] %v1502_v29  ;;  %1523 = vtanh.f32 %v875_v16 }
 0x2a4   : > { %v1506_v30 = vpop.eup %1505  ;;  %936 = vst [vmem:[#allocation10 + $0x20] sm:$0xff] %v1504_v60  ;;  %1525 = vtanh.f32 %v2131_v42 }
 0x2a5   : > { %v1508_v61 = vpop.eup %1507  ;;  %937 = vst [vmem:[#allocation10 + $0x28] sm:$0xff] %v1506_v30 }
 0x2a6   : > { %v1510_v62 = vpop.eup %1509  ;;  %938 = vst [vmem:[#allocation10 + $0x30] sm:$0xff] %v1508_v61 }
 0x2a7   : > { %v1512_v34 = vpop.eup %1511  ;;  %939 = vst [vmem:[#allocation10 + $0x38] sm:$0xff] %v1510_v62 }
 0x2a8   : > { %v1514_v35 = vpop.eup %1513  ;;  %940 = vst [vmem:[#allocation10 + $0x40] sm:$0xff] %v1512_v34 }
 0x2a9   : > { %v1516_v43 = vpop.eup %1515  ;;  %941 = vst [vmem:[#allocation10 + $0x48] sm:$0xff] %v1514_v35 }
 0x2aa   : > { %v1518_v44 = vpop.eup %1517  ;;  %942 = vst [vmem:[#allocation10 + $0x50] sm:$0xff] %v1516_v43 }
 0x2ab   : > { %v1520_v49 = vpop.eup %1519  ;;  %943 = vst [vmem:[#allocation10 + $0x58] sm:$0xff] %v1518_v44 }
 0x2ac   : > { %v1522_v50 = vpop.eup %1521  ;;  %944 = vst [vmem:[#allocation10 + $0x60] sm:$0xff] %v1520_v49 }
 0x2ad   : > { %v1524_v63 = vpop.eup %1523  ;;  %945 = vst [vmem:[#allocation10 + $0x68] sm:$0xff] %v1522_v50 }
 0x2ae   : > { %v1526_v0 = vpop.eup %1525  ;;  %946 = vst [vmem:[#allocation10 + $0x70] sm:$0xff] %v1524_v63 }
 0x2af   : > { %947 = vst [vmem:[#allocation10 + $0x78] sm:$0xff] %v1526_v0 }
 0x2b0 PF: > { %s1725_s16 = smov [#allocation10]  }
 0x2b1   : > { %s954_s24 = sshll.u32 %s1725_s16, 4  ;;  %s955_s24 = int_to_ptr.vmem [resolvable:$true] %s954_s24 }
 0x2b2   : > { %s1643_s10 = scalar_lea.vmem %s955_s24, 2048  ;;  %p1650_p11 = scmp.lt.s32.totalorder %s955_s24, %s955_s24 }
 0x2b3   : > { %p1644_p2 = scmp.ne.s32.totalorder %s955_s24, %s1643_s10  ;;  %p1651_p12 = scmp.lt.s32.totalorder %s1643_s10, %s1643_s10 }
 0x2b5   : > { %p1645_p4 = pnand %p1644_p2, %p1081_p0  ;;  %p1652_p13 = por %p1651_p12, %p1650_p11 }
 0x2b7   : > { %p1646_p7 = pneg %p1645_p4 }
 0x2b9   : > { %p1653_p5 = pnand %p1652_p13, %p1646_p7 }
 0x2bb   : > { %1656 = shalt.err (!%p1653_p5)
}
 0x2bc   : > { %s1657_s15 = scalar_lea.hbm %s2193_s5, 2048 }
 0x2bd   : > { %p1658_p10 = scmp.ne.s32.totalorder %s2193_s5, %s1657_s15  ;;  %p1663_p3 = scmp.lt.u32.totalorder %s1657_s15, %s2193_s5 }
 0x2bf   : > { %p1659_p1 = pnand %p1658_p10, %p1081_p0 }
 0x2c1   : > { %p1660_p9 = pneg %p1659_p1 }
 0x2c3   : > { %p1665_p6 = pnand %p1663_p3, %p1660_p9 }
 0x2c5   : > { %1668 = shalt.err (!%p1665_p6)
}
 0x2c6   : > { %s1726_s18 = smov 128   ;;  %s1727_s29 = smov 8  }
 0x2c7   : > { %1422 = dma.vmem_to_hbm [thread:$0]  (%p1081_p0), %s955_s24, 2048, %s2193_s5, [#allocation5], %s1726_s18, %s1726_s18, %s1727_s29  }
 0x2c8   : > { %1698 = dma.done.wait (%p1081_p0), [#allocation5], 2048  }
 0x2c9   : > { %1700 = vsyncadd (%p1081_p0), [#allocation5], 4294965248 }
 0x2ca PF: > { %p15_p8 = scmp.ge.s32.totalorder %s1780_s23, 6   ;;  %s2219_s18 = smov %s1707_s19 }
 0x2cb   : > { %s2220_s19 = smov %s1711_s20  ;;  %s2221_s20 = smov %s1790_s26 }
 0x2cc   : > { %s2222_s21 = smov %s1780_s23  ;;  %17 = sbr.rel (!%p15_p8) target bundleno = 4 (0x4), region = 110 }
 0x2d3   :  { %970 = vsyncpa [#allocation4], 1 }
 0x2d4   :  { %972 = vsyncpa [#allocation4 + $0x1], 1 }
 0x2d5   :  { %973 = vsyncpa [#allocation7], 1 }
 0x2d6   :  { %974 = vsyncpa [#allocation5], 1 }
 0x2d7   :  { %976 = vsyncpa [#allocation5 + $0x1], 1 }

</bundles_post_ra>
